<compile_context>
chip_gen: v6e
topology: v6e:2x2x1
jax: 0.10.0
libtpu: 0.0.40
codegen_flags: <defaults>
</compile_context>

<pallas_src>
import functools

import numpy as np
import jax
import jax.numpy as jnp
from jax import lax
from jax.experimental import pallas as pl
from jax.experimental.pallas import tpu as pltpu

EPS = 1e-5  # nn.LayerNorm default


def _round_up(a, b):
    return ((a + b - 1) // b) * b


# ----------------------------- Pallas kernel --------------------------------
def _embed_norm_kernel(ps_ref, pm_ref, pl_ref,
                       ws_ref, wm_ref, wl_ref,
                       cs_ref, cm_ref, cl_ref,
                       os_ref, om_ref, ol_ref, *, e_real):
    """Fused 3-scale patch embedding + LayerNorm over one row tile.

    c*_ref pack [bias; gamma; beta] as rows of a (3, dim) array per scale.
    The LayerNorm statistics are computed jointly over all three scales
    (which together make up the embed_dim features) with a two-pass variance.
    Garbage rows of a ragged last tile only affect themselves (per-row math)
    and are clipped by Pallas on writeback.
    """
    inv_e = jnp.float32(1.0 / e_real)

    def embed(p_ref, w_ref, c_ref):
        y = jnp.dot(p_ref[...], w_ref[...], preferred_element_type=jnp.float32)
        return y + c_ref[0:1, :]                     # + bias row

    y_s = embed(ps_ref, ws_ref, cs_ref)
    y_m = embed(pm_ref, wm_ref, cm_ref)
    y_l = embed(pl_ref, wl_ref, cl_ref)

    mean = (jnp.sum(y_s, axis=-1, keepdims=True)
            + jnp.sum(y_m, axis=-1, keepdims=True)
            + jnp.sum(y_l, axis=-1, keepdims=True)) * inv_e
    d_s = y_s - mean
    d_m = y_m - mean
    d_l = y_l - mean
    var = (jnp.sum(d_s * d_s, axis=-1, keepdims=True)
           + jnp.sum(d_m * d_m, axis=-1, keepdims=True)
           + jnp.sum(d_l * d_l, axis=-1, keepdims=True)) * inv_e
    inv_std = lax.rsqrt(var + EPS)

    def write(d, c_ref, o_ref):
        # gamma is row 1, beta is row 2 of the packed constant array.
        o_ref[...] = (d * inv_std * c_ref[1:2, :] + c_ref[2:3, :]).astype(o_ref.dtype)

    write(d_s, cs_ref, os_ref)
    write(d_m, cm_ref, om_ref)
    write(d_l, cl_ref, ol_ref)


# ------------------------------ JAX glue -------------------------------------
def _nearest_indices(n_in, n_out):
    # torch F.interpolate(mode='nearest'): src = floor(dst * in/out)
    return np.minimum(np.floor(np.arange(n_out) * (n_in / n_out)),
                      n_in - 1).astype(np.int32)


def _take_static(x, idx, axis):
    idx = np.asarray(idx)
    if np.array_equal(idx, np.arange(idx.shape[0])):   # plain crop -> slice
        return lax.slice_in_dim(x, 0, int(idx.shape[0]), axis=axis)
    return jnp.take(x, jnp.asarray(idx, dtype=jnp.int32), axis=axis)


def _gather_patches(x, k, ih, iw):
    """x: [B,C,T,H,W].  Select patch rows `ih` / cols `iw` of the (k,k) patch
    grid and return [B*T*th*tw, C*k*k] with feature order (C, kh, kw)."""
    B, C, T, H, W = x.shape
    th, tw = len(ih), len(iw)
    rh = (np.asarray(ih)[:, None] * k + np.arange(k)[None, :]).reshape(-1)
    rw = (np.asarray(iw)[:, None] * k + np.arange(k)[None, :]).reshape(-1)
    xg = _take_static(x, rh, axis=3)
    xg = _take_static(xg, rw, axis=4)                  # [B,C,T,th*k,tw*k]
    xg = jnp.transpose(xg, (0, 2, 1, 3, 4))            # [B,T,C,th*k,tw*k]
    xg = xg.reshape(B, T, C, th, k, tw, k)
    xg = jnp.transpose(xg, (0, 1, 3, 5, 2, 4, 6))      # [B,T,th,tw,C,k,k]
    return xg.reshape(B * T * th * tw, C * k * k)


def multiscale_patch_embed(x, params, *, tm=512, compute_dtype=jnp.bfloat16,
                           out_dtype=jnp.bfloat16):
    """Forward pass. x: [B, C, T, H, W] float32. Returns ([(B*T),(h*w),E], T)."""
    ws, bs, wm, bm, wl, bl, gamma, beta = (
        params["ws"], params["bs"], params["wm"], params["bm"],
        params["wl"], params["bl"], params["gamma"], params["beta"])
    B, C, T, H, W = x.shape
    sd, md, ld = ws.shape[1], wm.shape[1], wl.shape[1]
    E = sd + md + ld
    Ks, Km, Kl = C * 16, C * 64, C * 144

    th, tw = H // 12, W // 12                  # large-scale grid defines target
    M = B * T * th * tw

    # Fold the nearest-neighbour downsample into the patch gather: only the
    # th*tw patches of each scale that survive are extracted from HBM.
    ih_s, iw_s = _nearest_indices(H // 4, th), _nearest_indices(W // 4, tw)
    ih_m, iw_m = _nearest_indices(H // 8, th), _nearest_indices(W // 8, tw)
    ih_l, iw_l = np.arange(th, dtype=np.int32), np.arange(tw, dtype=np.int32)
    # NOTE: torch interpolates size=(T, th, tw); the temporal axis is identity.

    xc = x.astype(compute_dtype)               # halve HBM traffic of patch prep
    ps = _gather_patches(xc, 4, ih_s, iw_s)    # [M, Ks]
    pm = _gather_patches(xc, 8, ih_m, iw_m)    # [M, Km]
    plg = _gather_patches(xc, 12, ih_l, iw_l)  # [M, Kl]

    ws_c = ws.astype(compute_dtype)
    wm_c = wm.astype(compute_dtype)
    wl_c = wl.astype(compute_dtype)

    # Packed per-scale constants: rows = [bias, gamma, beta].
    cs = jnp.stack([bs, gamma[:sd], beta[:sd]]).astype(jnp.float32)
    cm = jnp.stack([bm, gamma[sd:sd + md], beta[sd:sd + md]]).astype(jnp.float32)
    cl = jnp.stack([bl, gamma[sd + md:], beta[sd + md:]]).astype(jnp.float32)

    # Row tile: multiple of 8 (or the full row count).  Prefer >=2 row tiles so
    # v7x's two TensorCores both get work on the "parallel" axis.
    tm_eff = min(_round_up(tm, 8), M) if M >= 8 else M
    if tm_eff == M and M > 256:
        tm_eff = _round_up((M + 1) // 2, 8)
    grid0 = pl.cdiv(M, tm_eff)

    # Explicit VMEM budget: double-buffered patch/output tiles, (effectively
    # constant) weights, plus f32 intermediates; headroom kept well under
    # v7x's 64 MiB physical VMEM.
    in_b = jnp.dtype(compute_dtype).itemsize
    out_b = jnp.dtype(out_dtype).itemsize
    budget = (2 * tm_eff * (Ks + Km + Kl) * in_b           # patch tiles
              + 2 * (Ks * sd + Km * md + Kl * ld) * in_b   # weights
              + 2 * 3 * E * 4                              # bias/gamma/beta
              + 2 * tm_eff * E * out_b                     # output tiles
              + 4 * tm_eff * E * 4)                        # live f32 y/d values
    vmem_limit = min(int(budget * 1.5) + (4 << 20), 56 << 20)

    cost = pl.CostEstimate(
        flops=2 * M * (Ks * sd + Km * md + Kl * ld),
        transcendentals=M,
        bytes_accessed=((M * (Ks + Km + Kl) + Ks * sd + Km * md + Kl * ld) * in_b
                        + M * E * out_b + 3 * E * 4))

    kernel = functools.partial(_embed_norm_kernel, e_real=E)
    o_s, o_m, o_l = pl.pallas_call(
        kernel,
        out_shape=[jax.ShapeDtypeStruct((M, sd), out_dtype),
                   jax.ShapeDtypeStruct((M, md), out_dtype),
                   jax.ShapeDtypeStruct((M, ld), out_dtype)],
        grid_spec=pltpu.PrefetchScalarGridSpec(
            num_scalar_prefetch=0,
            grid=(grid0,),
            in_specs=[
                pl.BlockSpec((tm_eff, Ks), lambda i: (i, 0)),   # small patches
                pl.BlockSpec((tm_eff, Km), lambda i: (i, 0)),   # medium patches
                pl.BlockSpec((tm_eff, Kl), lambda i: (i, 0)),   # large patches
                pl.BlockSpec((Ks, sd), lambda i: (0, 0)),       # W_small
                pl.BlockSpec((Km, md), lambda i: (0, 0)),       # W_medium
                pl.BlockSpec((Kl, ld), lambda i: (0, 0)),       # W_large
                pl.BlockSpec((3, sd), lambda i: (0, 0)),        # bias/gamma/beta
                pl.BlockSpec((3, md), lambda i: (0, 0)),
                pl.BlockSpec((3, ld), lambda i: (0, 0)),
            ],
            out_specs=[
                pl.BlockSpec((tm_eff, sd), lambda i: (i, 0)),
                pl.BlockSpec((tm_eff, md), lambda i: (i, 0)),
                pl.BlockSpec((tm_eff, ld), lambda i: (i, 0)),
            ],
        ),
        compiler_params=pltpu.CompilerParams(
            dimension_semantics=("parallel",),
            vmem_limit_bytes=vmem_limit),
        cost_estimate=cost,
    )(ps, pm, plg, ws_c, wm_c, wl_c, cs, cm, cl)

    out = jnp.concatenate([o_s, o_m, o_l], axis=-1).reshape(B * T, th * tw, E)
    return out, T


# --------------------------- pure-JAX reference ------------------------------
def _ref_forward(x, params, compute_dtype=jnp.float32):
    """Faithful port of the PyTorch module. If compute_dtype=bfloat16, inputs
    and conv weights are rounded to bf16 but accumulation stays f32 (mirrors
    the kernel's numerics for a tight structural comparison)."""
    ws, bs, wm, bm, wl, bl, gamma, beta = (
        params["ws"], params["bs"], params["wm"], params["bm"],
        params["wl"], params["bl"], params["gamma"], params["beta"])
    B, C, T, H, W = x.shape
    sd, md, ld = ws.shape[1], wm.shape[1], wl.shape[1]
    x2 = jnp.transpose(x, (0, 2, 1, 3, 4)).reshape(B * T, C, H, W)
    x2 = x2.astype(compute_dtype)

    def conv(w_mat, b, k, od):
        w = jnp.transpose(w_mat.reshape(C, k, k, od), (3, 0, 1, 2))  # OIHW
        y = lax.conv_general_dilated(
            x2, w.astype(compute_dtype), (k, k), "VALID",
            dimension_numbers=("NCHW", "OIHW", "NCHW"),
            preferred_element_type=jnp.float32)
        return y + b.reshape(1, od, 1, 1)

    ys = conv(ws, bs, 4, sd)
    ym = conv(wm, bm, 8, md)
    yl = conv(wl, bl, 12, ld)
    th, tw = yl.shape[2], yl.shape[3]

    def near(y):
        ih = _nearest_indices(y.shape[2], th)
        iw = _nearest_indices(y.shape[3], tw)
        return y[:, :, ih][:, :, :, iw]

    yc = jnp.concatenate([near(ys), near(ym), yl], axis=1)            # [BT,E,h,w]
    yc = jnp.transpose(yc, (0, 2, 3, 1)).reshape(B * T, th * tw, -1)  # (b t)(h w) e
    mean = jnp.mean(yc, -1, keepdims=True)
    var = jnp.mean((yc - mean) ** 2, -1, keepdims=True)
    return (yc - mean) / jnp.sqrt(var + EPS) * gamma + beta


# --------------------------------- main ---------------------------------------
def _init_params(key, in_channels, embed_dim):
    sd = embed_dim // 3
    md = embed_dim // 3
    ld = embed_dim - sd - md
    ks = jax.random.split(key, 6)

    def uinit(k, shape, fan_in):
        bound = 1.0 / np.sqrt(fan_in)
        return jax.random.uniform(k, shape, jnp.float32, -bound, bound)

    Ks, Km, Kl = in_channels * 16, in_channels * 64, in_channels * 144
    return {
        "ws": uinit(ks[0], (Ks, sd), Ks), "bs": uinit(ks[1], (sd,), Ks),
        "wm": uinit(ks[2], (Km, md), Km), "bm": uinit(ks[3], (md,), Km),
        "wl": uinit(ks[4], (Kl, ld), Kl), "bl": uinit(ks[5], (ld,), Kl),
        "gamma": jnp.ones((embed_dim,), jnp.float32),
        "beta": jnp.zeros((embed_dim,), jnp.float32),
    }


if __name__ == "__main__":
    master_key = jax.random.PRNGKey(0)

    def run_case(B, C, T, H, W, embed_dim, salt):
        kx, kp = jax.random.split(jax.random.fold_in(master_key, salt))
        x = jax.random.normal(kx, (B, C, T, H, W), jnp.float32)
        params = _init_params(kp, C, embed_dim)

        out, t_out = multiscale_patch_embed(x, params)
        out = jax.block_until_ready(out)
        assert t_out == T

        # Tight structural check vs a reference using the same bf16
        # input/weight rounding (f32 accumulation); loose check vs pure-f32
        # PyTorch semantics (bf16-input + bf16-output tolerance).
        ref_bf16 = jax.block_until_ready(_ref_forward(x, params, jnp.bfloat16))
        ref_f32 = jax.block_until_ready(_ref_forward(x, params, jnp.float32))

        out_np = np.asarray(out.astype(jnp.float32))
        assert out_np.shape == ref_f32.shape, (out_np.shape, ref_f32.shape)
        np.testing.assert_allclose(out_np, np.asarray(ref_bf16),
                                   rtol=2e-2, atol=2e-2)
        np.testing.assert_allclose(out_np, np.asarray(ref_f32),
                                   rtol=6e-2, atol=6e-2)

    # Small, lane-unaligned embed_dim (masked output stores, general path).
    run_case(B=2, C=3, T=2, H=24, W=24, embed_dim=32, salt=0)
    # 128-aligned per-scale dims (fully lane-dense output stores).
    run_case(B=1, C=3, T=2, H=48, W=48, embed_dim=384, salt=1)

    print("KERNEL_OK")
</pallas_src>

<mosaic_0001>
module attributes {stable_mosaic.version = 11 : i64} {
  func.func @_embed_norm_kernel(%arg0: i32, %arg1: memref<16x48xbf16, #tpu.memory_space<vmem>>, %arg2: memref<16x192xbf16, #tpu.memory_space<vmem>>, %arg3: memref<16x432xbf16, #tpu.memory_space<vmem>>, %arg4: memref<48x10xbf16, #tpu.memory_space<vmem>>, %arg5: memref<192x10xbf16, #tpu.memory_space<vmem>>, %arg6: memref<432x12xbf16, #tpu.memory_space<vmem>>, %arg7: memref<3x10xf32, #tpu.memory_space<vmem>>, %arg8: memref<3x10xf32, #tpu.memory_space<vmem>>, %arg9: memref<3x12xf32, #tpu.memory_space<vmem>>, %arg10: memref<16x10xbf16, #tpu.memory_space<vmem>>, %arg11: memref<16x10xbf16, #tpu.memory_space<vmem>>, %arg12: memref<16x12xbf16, #tpu.memory_space<vmem>>) attributes {dimension_semantics = [#tpu.dimension_semantics<parallel>], iteration_bounds = array<i64: 1>, scalar_prefetch = 0 : i64, scratch_operands = 0 : i64, tpu.core_type = #tpu.core_type<tc>, window_params = [{transform_indices = @transform_0, window_bounds = array<i64: 16, 48>}, {transform_indices = @transform_1, window_bounds = array<i64: 16, 192>}, {transform_indices = @transform_2, window_bounds = array<i64: 16, 432>}, {pipeline_mode = #tpu.pipeline_mode<synchronous>, transform_indices = @transform_3, window_bounds = array<i64: 48, 10>}, {pipeline_mode = #tpu.pipeline_mode<synchronous>, transform_indices = @transform_4, window_bounds = array<i64: 192, 10>}, {pipeline_mode = #tpu.pipeline_mode<synchronous>, transform_indices = @transform_5, window_bounds = array<i64: 432, 12>}, {pipeline_mode = #tpu.pipeline_mode<synchronous>, transform_indices = @transform_6, window_bounds = array<i64: 3, 10>}, {pipeline_mode = #tpu.pipeline_mode<synchronous>, transform_indices = @transform_7, window_bounds = array<i64: 3, 10>}, {pipeline_mode = #tpu.pipeline_mode<synchronous>, transform_indices = @transform_8, window_bounds = array<i64: 3, 12>}, {transform_indices = @transform_9, window_bounds = array<i64: 16, 10>}, {transform_indices = @transform_10, window_bounds = array<i64: 16, 10>}, {transform_indices = @transform_11, window_bounds = array<i64: 16, 12>}]} {
    %c0 = arith.constant 0 : index
    %c0_0 = arith.constant 0 : index
    %0 = vector.load %arg1[%c0, %c0_0] : memref<16x48xbf16, #tpu.memory_space<vmem>>, vector<16x48xbf16>
    %c0_1 = arith.constant 0 : index
    %c0_2 = arith.constant 0 : index
    %1 = vector.load %arg4[%c0_1, %c0_2] : memref<48x10xbf16, #tpu.memory_space<vmem>>, vector<48x10xbf16>
    %cst = arith.constant dense<0.000000e+00> : vector<16x10xf32>
    %2 = tpu.matmul %0, %1, %cst {dimension_numbers = #tpu.dot_dimension_numbers<[1], [0], [0], [1], [0, 0, 1, 1], [], []>} : vector<16x48xbf16>, vector<48x10xbf16>, vector<16x10xf32> -> vector<16x10xf32>
    %c0_3 = arith.constant 0 : index
    %c0_4 = arith.constant 0 : index
    %3 = vector.load %arg7[%c0_3, %c0_4] : memref<3x10xf32, #tpu.memory_space<vmem>>, vector<1x10xf32>
    %4 = vector.broadcast %3 : vector<1x10xf32> to vector<16x10xf32>
    %5 = arith.addf %2, %4 : vector<16x10xf32>
    %c0_5 = arith.constant 0 : index
    %c0_6 = arith.constant 0 : index
    %6 = vector.load %arg2[%c0_5, %c0_6] : memref<16x192xbf16, #tpu.memory_space<vmem>>, vector<16x192xbf16>
    %c0_7 = arith.constant 0 : index
    %c0_8 = arith.constant 0 : index
    %7 = vector.load %arg5[%c0_7, %c0_8] : memref<192x10xbf16, #tpu.memory_space<vmem>>, vector<192x10xbf16>
    %cst_9 = arith.constant dense<0.000000e+00> : vector<16x10xf32>
    %8 = tpu.matmul %6, %7, %cst_9 {dimension_numbers = #tpu.dot_dimension_numbers<[1], [0], [0], [1], [0, 0, 1, 1], [], []>} : vector<16x192xbf16>, vector<192x10xbf16>, vector<16x10xf32> -> vector<16x10xf32>
    %c0_10 = arith.constant 0 : index
    %c0_11 = arith.constant 0 : index
    %9 = vector.load %arg8[%c0_10, %c0_11] : memref<3x10xf32, #tpu.memory_space<vmem>>, vector<1x10xf32>
    %10 = vector.broadcast %9 : vector<1x10xf32> to vector<16x10xf32>
    %11 = arith.addf %8, %10 : vector<16x10xf32>
    %c0_12 = arith.constant 0 : index
    %c0_13 = arith.constant 0 : index
    %12 = vector.load %arg3[%c0_12, %c0_13] : memref<16x432xbf16, #tpu.memory_space<vmem>>, vector<16x432xbf16>
    %c0_14 = arith.constant 0 : index
    %c0_15 = arith.constant 0 : index
    %13 = vector.load %arg6[%c0_14, %c0_15] : memref<432x12xbf16, #tpu.memory_space<vmem>>, vector<432x12xbf16>
    %cst_16 = arith.constant dense<0.000000e+00> : vector<16x12xf32>
    %14 = tpu.matmul %12, %13, %cst_16 {dimension_numbers = #tpu.dot_dimension_numbers<[1], [0], [0], [1], [0, 0, 1, 1], [], []>} : vector<16x432xbf16>, vector<432x12xbf16>, vector<16x12xf32> -> vector<16x12xf32>
    %c0_17 = arith.constant 0 : index
    %c0_18 = arith.constant 0 : index
    %15 = vector.load %arg9[%c0_17, %c0_18] : memref<3x12xf32, #tpu.memory_space<vmem>>, vector<1x12xf32>
    %16 = vector.broadcast %15 : vector<1x12xf32> to vector<16x12xf32>
    %17 = arith.addf %14, %16 : vector<16x12xf32>
    %cst_19 = arith.constant dense<0.000000e+00> : vector<16xf32>
    %18 = vector.multi_reduction <add>, %5, %cst_19 [1] : vector<16x10xf32> to vector<16xf32>
    %19 = vector.shape_cast %18 : vector<16xf32> to vector<16x1xf32>
    %cst_20 = arith.constant dense<0.000000e+00> : vector<16xf32>
    %20 = vector.multi_reduction <add>, %11, %cst_20 [1] : vector<16x10xf32> to vector<16xf32>
    %21 = vector.shape_cast %20 : vector<16xf32> to vector<16x1xf32>
    %22 = arith.addf %19, %21 : vector<16x1xf32>
    %cst_21 = arith.constant dense<0.000000e+00> : vector<16xf32>
    %23 = vector.multi_reduction <add>, %17, %cst_21 [1] : vector<16x12xf32> to vector<16xf32>
    %24 = vector.shape_cast %23 : vector<16xf32> to vector<16x1xf32>
    %25 = arith.addf %22, %24 : vector<16x1xf32>
    %cst_22 = arith.constant 3.125000e-02 : f32
    %26 = vector.broadcast %cst_22 : f32 to vector<16x1xf32>
    %27 = arith.mulf %25, %26 : vector<16x1xf32>
    %28 = vector.broadcast %27 : vector<16x1xf32> to vector<16x10xf32>
    %29 = arith.subf %5, %28 : vector<16x10xf32>
    %30 = vector.broadcast %27 : vector<16x1xf32> to vector<16x10xf32>
    %31 = arith.subf %11, %30 : vector<16x10xf32>
    %32 = vector.broadcast %27 : vector<16x1xf32> to vector<16x12xf32>
    %33 = arith.subf %17, %32 : vector<16x12xf32>
    %34 = arith.mulf %29, %29 : vector<16x10xf32>
    %cst_23 = arith.constant dense<0.000000e+00> : vector<16xf32>
    %35 = vector.multi_reduction <add>, %34, %cst_23 [1] : vector<16x10xf32> to vector<16xf32>
    %36 = vector.shape_cast %35 : vector<16xf32> to vector<16x1xf32>
    %37 = arith.mulf %31, %31 : vector<16x10xf32>
    %cst_24 = arith.constant dense<0.000000e+00> : vector<16xf32>
    %38 = vector.multi_reduction <add>, %37, %cst_24 [1] : vector<16x10xf32> to vector<16xf32>
    %39 = vector.shape_cast %38 : vector<16xf32> to vector<16x1xf32>
    %40 = arith.addf %36, %39 : vector<16x1xf32>
    %41 = arith.mulf %33, %33 : vector<16x12xf32>
    %cst_25 = arith.constant dense<0.000000e+00> : vector<16xf32>
    %42 = vector.multi_reduction <add>, %41, %cst_25 [1] : vector<16x12xf32> to vector<16xf32>
    %43 = vector.shape_cast %42 : vector<16xf32> to vector<16x1xf32>
    %44 = arith.addf %40, %43 : vector<16x1xf32>
    %cst_26 = arith.constant 3.125000e-02 : f32
    %45 = vector.broadcast %cst_26 : f32 to vector<16x1xf32>
    %46 = arith.mulf %44, %45 : vector<16x1xf32>
    %cst_27 = arith.constant 9.99999974E-6 : f32
    %47 = vector.broadcast %cst_27 : f32 to vector<16x1xf32>
    %48 = arith.addf %46, %47 : vector<16x1xf32>
    %49 = math.rsqrt %48 : vector<16x1xf32>
    %50 = vector.broadcast %49 : vector<16x1xf32> to vector<16x10xf32>
    %51 = arith.mulf %29, %50 : vector<16x10xf32>
    %c1 = arith.constant 1 : index
    %c0_28 = arith.constant 0 : index
    %52 = vector.load %arg7[%c1, %c0_28] : memref<3x10xf32, #tpu.memory_space<vmem>>, vector<1x10xf32>
    %53 = vector.broadcast %52 : vector<1x10xf32> to vector<16x10xf32>
    %54 = arith.mulf %51, %53 : vector<16x10xf32>
    %c2 = arith.constant 2 : index
    %c0_29 = arith.constant 0 : index
    %55 = vector.load %arg7[%c2, %c0_29] : memref<3x10xf32, #tpu.memory_space<vmem>>, vector<1x10xf32>
    %56 = vector.broadcast %55 : vector<1x10xf32> to vector<16x10xf32>
    %57 = arith.addf %54, %56 : vector<16x10xf32>
    %58 = arith.truncf %57 : vector<16x10xf32> to vector<16x10xbf16>
    %c0_30 = arith.constant 0 : index
    %c0_31 = arith.constant 0 : index
    %59 = vector.load %arg10[%c0_30, %c0_31] : memref<16x10xbf16, #tpu.memory_space<vmem>>, vector<16x10xbf16>
    tpu.vector_store %arg10[%c0_30, %c0_31], %58 {strides = array<i32>} : memref<16x10xbf16, #tpu.memory_space<vmem>>, vector<16x10xbf16>,
    %60 = vector.broadcast %49 : vector<16x1xf32> to vector<16x10xf32>
    %61 = arith.mulf %31, %60 : vector<16x10xf32>
    %c1_32 = arith.constant 1 : index
    %c0_33 = arith.constant 0 : index
    %62 = vector.load %arg8[%c1_32, %c0_33] : memref<3x10xf32, #tpu.memory_space<vmem>>, vector<1x10xf32>
    %63 = vector.broadcast %62 : vector<1x10xf32> to vector<16x10xf32>
    %64 = arith.mulf %61, %63 : vector<16x10xf32>
    %c2_34 = arith.constant 2 : index
    %c0_35 = arith.constant 0 : index
    %65 = vector.load %arg8[%c2_34, %c0_35] : memref<3x10xf32, #tpu.memory_space<vmem>>, vector<1x10xf32>
    %66 = vector.broadcast %65 : vector<1x10xf32> to vector<16x10xf32>
    %67 = arith.addf %64, %66 : vector<16x10xf32>
    %68 = arith.truncf %67 : vector<16x10xf32> to vector<16x10xbf16>
    %c0_36 = arith.constant 0 : index
    %c0_37 = arith.constant 0 : index
    %69 = vector.load %arg11[%c0_36, %c0_37] : memref<16x10xbf16, #tpu.memory_space<vmem>>, vector<16x10xbf16>
    tpu.vector_store %arg11[%c0_36, %c0_37], %68 {strides = array<i32>} : memref<16x10xbf16, #tpu.memory_space<vmem>>, vector<16x10xbf16>,
    %70 = vector.broadcast %49 : vector<16x1xf32> to vector<16x12xf32>
    %71 = arith.mulf %33, %70 : vector<16x12xf32>
    %c1_38 = arith.constant 1 : index
    %c0_39 = arith.constant 0 : index
    %72 = vector.load %arg9[%c1_38, %c0_39] : memref<3x12xf32, #tpu.memory_space<vmem>>, vector<1x12xf32>
    %73 = vector.broadcast %72 : vector<1x12xf32> to vector<16x12xf32>
    %74 = arith.mulf %71, %73 : vector<16x12xf32>
    %c2_40 = arith.constant 2 : index
    %c0_41 = arith.constant 0 : index
    %75 = vector.load %arg9[%c2_40, %c0_41] : memref<3x12xf32, #tpu.memory_space<vmem>>, vector<1x12xf32>
    %76 = vector.broadcast %75 : vector<1x12xf32> to vector<16x12xf32>
    %77 = arith.addf %74, %76 : vector<16x12xf32>
    %78 = arith.truncf %77 : vector<16x12xf32> to vector<16x12xbf16>
    %c0_42 = arith.constant 0 : index
    %c0_43 = arith.constant 0 : index
    %79 = vector.load %arg12[%c0_42, %c0_43] : memref<16x12xbf16, #tpu.memory_space<vmem>>, vector<16x12xbf16>
    tpu.vector_store %arg12[%c0_42, %c0_43], %78 {strides = array<i32>} : memref<16x12xbf16, #tpu.memory_space<vmem>>, vector<16x12xbf16>,
    return
  }
  func.func @transform_0(%arg0: i32) -> (i32, i32) {
    %c0_i32 = arith.constant 0 : i32
    %c0_i32_0 = arith.constant 0 : i32
    return %arg0, %c0_i32 : i32, i32
  }
  func.func @transform_1(%arg0: i32) -> (i32, i32) {
    %c0_i32 = arith.constant 0 : i32
    %c0_i32_0 = arith.constant 0 : i32
    return %arg0, %c0_i32 : i32, i32
  }
  func.func @transform_2(%arg0: i32) -> (i32, i32) {
    %c0_i32 = arith.constant 0 : i32
    %c0_i32_0 = arith.constant 0 : i32
    return %arg0, %c0_i32 : i32, i32
  }
  func.func @transform_3(%arg0: i32) -> (i32, i32) {
    %c0_i32 = arith.constant 0 : i32
    %c0_i32_0 = arith.constant 0 : i32
    %c0_i32_1 = arith.constant 0 : i32
    return %c0_i32, %c0_i32_0 : i32, i32
  }
  func.func @transform_4(%arg0: i32) -> (i32, i32) {
    %c0_i32 = arith.constant 0 : i32
    %c0_i32_0 = arith.constant 0 : i32
    %c0_i32_1 = arith.constant 0 : i32
    return %c0_i32, %c0_i32_0 : i32, i32
  }
  func.func @transform_5(%arg0: i32) -> (i32, i32) {
    %c0_i32 = arith.constant 0 : i32
    %c0_i32_0 = arith.constant 0 : i32
    %c0_i32_1 = arith.constant 0 : i32
    return %c0_i32, %c0_i32_0 : i32, i32
  }
  func.func @transform_6(%arg0: i32) -> (i32, i32) {
    %c0_i32 = arith.constant 0 : i32
    %c0_i32_0 = arith.constant 0 : i32
    %c0_i32_1 = arith.constant 0 : i32
    return %c0_i32, %c0_i32_0 : i32, i32
  }
  func.func @transform_7(%arg0: i32) -> (i32, i32) {
    %c0_i32 = arith.constant 0 : i32
    %c0_i32_0 = arith.constant 0 : i32
    %c0_i32_1 = arith.constant 0 : i32
    return %c0_i32, %c0_i32_0 : i32, i32
  }
  func.func @transform_8(%arg0: i32) -> (i32, i32) {
    %c0_i32 = arith.constant 0 : i32
    %c0_i32_0 = arith.constant 0 : i32
    %c0_i32_1 = arith.constant 0 : i32
    return %c0_i32, %c0_i32_0 : i32, i32
  }
  func.func @transform_9(%arg0: i32) -> (i32, i32) {
    %c0_i32 = arith.constant 0 : i32
    %c0_i32_0 = arith.constant 0 : i32
    return %arg0, %c0_i32 : i32, i32
  }
  func.func @transform_10(%arg0: i32) -> (i32, i32) {
    %c0_i32 = arith.constant 0 : i32
    %c0_i32_0 = arith.constant 0 : i32
    return %arg0, %c0_i32 : i32, i32
  }
  func.func @transform_11(%arg0: i32) -> (i32, i32) {
    %c0_i32 = arith.constant 0 : i32
    %c0_i32_0 = arith.constant 0 : i32
    return %arg0, %c0_i32 : i32, i32
  }
}

</mosaic_0001>

<bundles_post_ra>
// kernel: tpu_custom_call.1
= control target key start
LH: loop header
LB: loop body
LE: loop exit
PB: predicated region body
PF: predicated region fallthrough
CT: control target
= control target key end

     0   :  { %17 = vsyncpa [#allocation3], 0  ;;  %v1035_v1 = vmov 0.0   ;;  %vm1036_vm0 = vmmov 0   ;;  %vm74_vm1 = vcmask 392192   ;;  %v1037_v12 = vmov 0   ;;  %s1336_s0 = inlined_call_operand.vmem [shape: bf16[16,48], index: 0, kind: input, shape index: {}]   ;;  %s1337_s1 = inlined_call_operand.vmem [shape: bf16[16,192], index: 1, kind: input, shape index: {}]   ;;  %s1338_s2 = inlined_call_operand.vmem [shape: bf16[16,432], index: 2, kind: input, shape index: {}]   ;;  %s1339_s3 = inlined_call_operand.vmem [shape: bf16[48,10], index: 3, kind: input, shape index: {}]   ;;  %s1340_s4 = inlined_call_operand.vmem [shape: bf16[192,10], index: 4, kind: input, shape index: {}]   ;;  %s1341_s5 = inlined_call_operand.vmem [shape: bf16[432,12], index: 5, kind: input, shape index: {}]   ;;  %s1342_s6 = inlined_call_operand.vmem [shape: f32[3,10], index: 6, kind: input, shape index: {}]   ;;  %s1343_s7 = inlined_call_operand.vmem [shape: f32[3,10], index: 7, kind: input, shape index: {}]   ;;  %s1344_s8 = inlined_call_operand.vmem [shape: f32[3,12], index: 8, kind: input, shape index: {}]   ;;  %s1345_s9 = inlined_call_operand.hbm [shape: bf16[16,10], index: 9, kind: output, shape index: {0}]   ;;  %s1346_s10 = inlined_call_operand.hbm [shape: bf16[16,10], index: 10, kind: output, shape index: {1}]   ;;  %s1347_s11 = inlined_call_operand.hbm [shape: bf16[16,12], index: 11, kind: output, shape index: {2}]  }
   0x1   :  { %v915_v0 = vld [vmem:[%s1339_s3 + $0x10] sm:$0xff]   ;;  %897 = vmatprep.subr.bf16.mxu1 %v1035_v1  ;;  %v916_v2 = vld [vmem:[%s1341_s5 + $0x78] sm:$0xff]   ;;  %903 = vmatprep.mubr.msk.bf16.mxu1 %vm1036_vm0, %v1035_v1  ;;  %v918_v4 = vld [vmem:[%s1339_s3 + $0x8] sm:$0xff]   ;;  %vm231_vm2 = vcmask 523264  }
   0x2   :  { %898 = vmatpush3.bf16.msra.mxu1 %v915_v0  ;;  %v917_v3 = vld [vmem:[%s1341_s5 + $0x38] sm:$0xff]   ;;  %875 = vmatprep.subr.bf16.mxu0 %v916_v2  ;;  %v919_v5 = vld [vmem:[%s1341_s5 + $0x70] sm:$0xff]   ;;  %v921_v7 = vld [vmem:[%s1339_s3] sm:$0xff]  }
   0x3   :  { %899 = vmatprep.subr.bf16.mxu1 %v1035_v1  ;;  %876 = vmatpush3.bf16.msra.mxu0 %v917_v3  ;;  %v920_v6 = vld [vmem:[%s1341_s5 + $0x30] sm:$0xff]   ;;  %v922_v8 = vld [vmem:[%s1341_s5 + $0x68] sm:$0xff]   ;;  %v924_v10 = vld [vmem:[%s1336_s0] sm:$0xff]  }
   0x4   :  { %877 = vmatprep.subr.bf16.mxu0 %v919_v5  ;;  %v923_v9 = vld [vmem:[%s1341_s5 + $0x28] sm:$0xff]   ;;  %v925_v11 = vld [vmem:[%s1340_s4 + $0x38] sm:$0xff]   ;;  %v926_v13 = vld [vmem:[%s1341_s5 + $0x60] sm:$0xff]  }
   0x5   :  { %v927_v14 = vld [vmem:[%s1341_s5 + $0x20] sm:$0xff]   ;;  %v928_v15 = vld [vmem:[%s1340_s4 + $0x30] sm:$0xff]   ;;  %v929_v16 = vld [vmem:[%s1341_s5 + $0x58] sm:$0xff]  }
   0x6   :  { %900 = vmatpush3.bf16.msra.mxu1 %v918_v4  ;;  %v930_v17 = vld [vmem:[%s1341_s5 + $0x18] sm:$0xff]   ;;  %v932_v18 = vld [vmem:[%s1341_s5 + $0x50] sm:$0xff]   ;;  %v931_v19 = vld [vmem:[%s1340_s4 + $0x28] sm:$0xff]  }
   0x7   :  { %901 = vmatprep.subr.bf16.mxu1 %v1035_v1  ;;  %878 = vmatpush3.bf16.msra.mxu0 %v920_v6  ;;  %v933_v20 = vld [vmem:[%s1341_s5 + $0x10] sm:$0xff]   ;;  %v935_v21 = vld [vmem:[%s1341_s5 + $0x48] sm:$0xff]   ;;  %v934_v22 = vld [vmem:[%s1340_s4 + $0x20] sm:$0xff]  }
   0x8   :  { %879 = vmatprep.subr.bf16.mxu0 %v922_v8  ;;  %v936_v23 = vld [vmem:[%s1341_s5 + $0x8] sm:$0xff]   ;;  %v937_v24 = vld [vmem:[%s1340_s4 + $0x18] sm:$0xff]   ;;  %v938_v25 = vld [vmem:[%s1341_s5 + $0x40] sm:$0xff]  }
   0x9   :  { %v942_v26 = vld [vmem:[%s1338_s2 + $0x4] ss:$16 sps:$4 sm:$0xff]   ;;  %v940_v29 = vld [vmem:[%s1338_s2] ss:$16 sps:$4 sm:$0xff]   ;;  %v944_v30 = vld [vmem:[%s1341_s5 + $0xb8] sm:$0xff]  }
   0xa   :  { %902 = vmatpush3.bf16.msra.mxu1 %v921_v7  ;;  %v939_v27 = vld [vmem:[%s1341_s5] sm:$0xff]   ;;  %555 = vmatprep.mubr.bf16.mxu0 %v942_v26  ;;  %v943_v28 = vld [vmem:[%s1340_s4 + $0x10] sm:$0xff]   ;;  %v945_v31 = vld [vmem:[%s1340_s4 + $0x8] sm:$0xff]  }
   0xb   :  { %235 = vmatprep.subr.bf16.mxu1 %v1037_v12  ;;  %880 = vmatpush3.bf16.msra.mxu0 %v923_v9  ;;  %v946_v32 = vld [vmem:[%s1341_s5 + $0xb0] sm:$0xff]   ;;  %v947_v33 = vld [vmem:[%s1340_s4] sm:$0xff]   ;;  %v948_v34 = vld [vmem:[%s1341_s5 + $0xa8] sm:$0xff]  }
   0xc   :  { %881 = vmatprep.subr.bf16.mxu0 %v926_v13  ;;  %v957_v35 = vld [vmem:[%s1337_s1 + $0x4] ss:$8 sps:$4 sm:$0xff]   ;;  %v949_v36 = vld [vmem:[%s1340_s4 + $0x58] sm:$0xff]   ;;  %v951_v38 = vld [vmem:[%s1340_s4 + $0x50] sm:$0xff]  }
   0xd   :  { %904 = vmatmul.mubr.msk.bf16.vlgmr.msra.gmra.mxu1 %vm74_vm1, %v924_v10  ;;  %v950_v37 = vld [vmem:[%s1341_s5 + $0xa0] sm:$0xff]   ;;  %v964_v39 = vld [vmem:[%s1338_s2 + $0xc] ss:$16 sps:$4 sm:$0xff]  }
   0xe   :  { %236 = vmatpush1.bf16.msra.mxu1 %v925_v11  ;;  %819 = vmatprep.mubr.msk.bf16.mxu1 %vm231_vm2, %v957_v35 }
   0xf   :  { %237 = vmatprep.subr.bf16.mxu1 %v1037_v12  ;;  %882 = vmatpush3.bf16.msra.mxu0 %v927_v14 }
  0x10   :  { %883 = vmatprep.subr.bf16.mxu0 %v929_v16 }
  0x12   :  { %238 = vmatpush1.bf16.msra.mxu1 %v928_v15 }
  0x13   :  { %239 = vmatprep.subr.bf16.mxu1 %v1037_v12  ;;  %884 = vmatpush3.bf16.msra.mxu0 %v930_v17 }
  0x14   :  { %885 = vmatprep.subr.bf16.mxu0 %v932_v18 }
  0x16   :  { %240 = vmatpush1.bf16.msra.mxu1 %v931_v19 }
  0x17   :  { %241 = vmatprep.subr.bf16.mxu1 %v1037_v12  ;;  %886 = vmatpush3.bf16.msra.mxu0 %v933_v20 }
  0x18   :  { %887 = vmatprep.subr.bf16.mxu0 %v935_v21 }
  0x1a   :  { %242 = vmatpush1.bf16.msra.mxu1 %v934_v22 }
  0x1b   :  { %243 = vmatprep.subr.bf16.mxu1 %v1037_v12  ;;  %888 = vmatpush3.bf16.msra.mxu0 %v936_v23 }
  0x1c   :  { %889 = vmatprep.subr.bf16.mxu0 %v938_v25 }
  0x1e   :  { %244 = vmatpush1.bf16.msra.mxu1 %v937_v24 }
  0x1f   :  { %245 = vmatprep.subr.bf16.mxu1 %v1037_v12  ;;  %890 = vmatpush3.bf16.msra.mxu0 %v939_v27 }
  0x20   :  { %564 = vmatprep.subr.bf16.mxu0 %v1037_v12 }
  0x22   :  { %246 = vmatpush1.bf16.msra.mxu1 %v943_v28  ;;  %556 = vmatmul.mubr.bf16.vlgmr.msra.gmra.mxu0 %v940_v29 }
  0x23   :  { %247 = vmatprep.subr.bf16.mxu1 %v1037_v12  ;;  %565 = vmatpush1.bf16.msra.mxu0 %v944_v30 }
  0x24   :  { %566 = vmatprep.subr.bf16.mxu0 %v1037_v12 }
  0x26   :  { %248 = vmatpush1.bf16.msra.mxu1 %v945_v31 }
  0x27   :  { %249 = vmatprep.subr.bf16.mxu1 %v1037_v12  ;;  %567 = vmatpush1.bf16.msra.mxu0 %v946_v32 }
  0x28   :  { %568 = vmatprep.subr.bf16.mxu0 %v1037_v12 }
  0x2a   :  { %250 = vmatpush1.bf16.msra.mxu1 %v947_v33 }
  0x2b   :  { %259 = vmatprep.subr.bf16.mxu1 %v1037_v12  ;;  %569 = vmatpush1.bf16.msra.mxu0 %v948_v34 }
  0x2c   :  { %570 = vmatprep.subr.bf16.mxu0 %v1037_v12 }
  0x2e   :  { %260 = vmatpush2.bf16.msra.mxu1 %v949_v36 }
  0x2f   :  { %261 = vmatprep.subr.bf16.mxu1 %v1037_v12 }
  0x30   :  { %18 = vsyncpa [#allocation5], 0  ;;  %571 = vmatpush1.bf16.msra.mxu0 %v950_v37  ;;  %v952_v40 = vld [vmem:[%s1341_s5 + $0x98] sm:$0xff]   ;;  %852 = vmatprep.mubr.msk.bf16.mxu0 %vm74_vm1, %v964_v39  ;;  %v953_v41 = vld [vmem:[%s1340_s4 + $0x48] sm:$0xff]   ;;  %vm605_vm3 = vcmask 80896   ;;  %vm620_vm4 = vcmask 97280  }
  0x31   :  { %572 = vmatprep.subr.bf16.mxu0 %v1037_v12  ;;  %v954_v42 = vld [vmem:[%s1341_s5 + $0x90] sm:$0xff]   ;;  %v955_v43 = vld [vmem:[%s1340_s4 + $0x40] sm:$0xff]   ;;  %v956_v44 = vld [vmem:[%s1341_s5 + $0x88] sm:$0xff]   ;;  %vm695_vm5 = vcmask 76800   ;;  %vm748_vm6 = vcmask 93184   ;;  %s1040_s24 = smov [#allocation6]  }
  0x32   :  { %262 = vmatpush2.bf16.msra.mxu1 %v951_v38  ;;  %v959_v45 = vld [vmem:[%s1337_s1] ss:$8 sps:$4 sm:$0xff]   ;;  %v961_v47 = vld [vmem:[%s1341_s5 + $0xd0] sm:$0xff]   ;;  %s780_s25 = sshll.u32 %s1040_s24, 4  ;;  %s1319_s25 = int_to_ptr.vmem [resolvable:$true] %s780_s25 }
  0x33   :  { %263 = vmatprep.subr.bf16.mxu1 %v1037_v12  ;;  %v960_v46 = vld [vmem:[%s1341_s5 + $0x80] sm:$0xff]   ;;  %v962_v48 = vld [vmem:[%s1341_s5 + $0xc8] sm:$0xff]  }
  0x34   :  { %573 = vmatpush1.bf16.msra.mxu0 %v952_v40  ;;  %v963_v49 = vld [vmem:[%s1341_s5 + $0xc0] sm:$0xff]   ;;  %v966_v50 = vld [vmem:[%s1338_s2 + $0x8] ss:$16 sps:$4 sm:$0xff]  }
  0x35   :  { %574 = vmatprep.subr.bf16.mxu0 %v1037_v12  ;;  %v798_v51 = vld [vmem:[%s1342_s6] ss:$0 sm:$0xff] }
  0x36   :  { %264 = vmatpush2.bf16.msra.mxu1 %v953_v41  ;;  %v804_v60 = vld [vmem:[%s1343_s7] ss:$0 sm:$0xff] }
  0x37   :  { %265 = vmatprep.subr.bf16.mxu1 %v1037_v12  ;;  %v820_v10 = vld [vmem:[%s1344_s8] ss:$0 sm:$0xff] }
  0x38   :  { %575 = vmatpush1.bf16.msra.mxu0 %v954_v42 }
  0x39   :  { %576 = vmatprep.subr.bf16.mxu0 %v1037_v12 }
  0x3a   :  { %266 = vmatpush2.bf16.msra.mxu1 %v955_v43 }
  0x3c   :  { %577 = vmatpush1.bf16.msra.mxu0 %v956_v44 }
  0x3d   :  { %268 = vmatmul.mubr.bf16.vlgmr.msra.gmra.mxu1 %v959_v45  ;;  %578 = vmatprep.subr.bf16.mxu0 %v1037_v12 }
  0x40   :  { %579 = vmatpush1.bf16.msra.mxu0 %v960_v46 }
  0x41   :  { %590 = vmatprep.subr.bf16.mxu0 %v1037_v12 }
  0x44   :  { %591 = vmatpush2.bf16.msra.mxu0 %v961_v47 }
  0x45   :  { %592 = vmatprep.subr.bf16.mxu0 %v1037_v12 }
  0x48   :  { %593 = vmatpush2.bf16.msra.mxu0 %v962_v48 }
  0x49   :  { %594 = vmatprep.subr.bf16.mxu0 %v1037_v12 }
  0x4c   :  { %595 = vmatpush2.bf16.msra.mxu0 %v963_v49 }
  0x4f   :  { %597 = vmatmul.mubr.bf16.vlgmr.msra.gmra.mxu0 %v966_v50 }
  0xcd   :  { %v112_v52 = vpop.f32.mrf.mxu1 }
  0xce   :  { %v113_v53 = vadd.f32 %v798_v51, %v112_v52 }
  0xcf   :  { %v905_v54 = vpop.f32.mrf.mxu1 }
  0xd0   :  { %v606_v55 = vsel %vm605_vm3, %v113_v53, 0.0 }
  0xd1   :  { %v115_v56 = vpop.f32.mrf.mxu1  ;;  %607 = vadd.xlane.f32.xlu0 %v606_v55 }
  0xd2   :  { %v116_v57 = vadd.f32 %v798_v51, %v115_v56 }
  0xd3   :  { %v906_v58 = vpop.f32.mrf.mxu1 }
  0xd4   :  { %v609_v59 = vsel %vm605_vm3, %v116_v57, 0.0 }
  0xd5   :  { %610 = vadd.xlane.f32.xlu0 %v609_v59 }
  0xe2   :  { %v891_v63 = vpop.f32.mrf.mxu0 }
  0xe4   :  { %v892_v4 = vpop.f32.mrf.mxu0 }
  0xe5   :  { %v893_v8 = vadd.f32 %v892_v4, %v891_v63  ;;  %v853_v4 = vld [vmem:[%s1342_s6 + $0x1] ss:$0 sm:$0xff] }
  0xe6   :  { %v894_v7 = vpop.f32.mrf.mxu0 }
  0xe7   :  { %v558_v12 = vadd.f32 %v893_v8, %v820_v10 }
  0xe8   :  { %v895_v9 = vpop.f32.mrf.mxu0 }
  0xe9   :  { %v896_v11 = vadd.f32 %v895_v9, %v894_v7  ;;  %v858_v9 = vld [vmem:[%s1343_s7 + $0x2] ss:$0 sm:$0xff] }
  0xeb   :  { %v561_v16 = vadd.f32 %v896_v11, %v820_v10  ;;  %v854_v10 = vld [vmem:[%s1342_s6 + $0x2] ss:$0 sm:$0xff]  ;;  %s1038_s6 = smov [#allocation4]  }
  0xfd   :  { %v269_v61 = vpop.f32.mrf.mxu1 }
  0xfe   :  { %v270_v62 = vadd.f32 %v804_v60, %v269_v61 }
  0xff   :  { %v271_v0 = vpop.f32.mrf.mxu1 }
 0x100   :  { %v612_v1 = vsel %vm605_vm3, %v270_v62, 0.0 }
 0x101   :  { %v272_v2 = vpop.f32.mrf.mxu1  ;;  %613 = vadd.xlane.f32.xlu1 %v612_v1 }
 0x102   :  { %v273_v3 = vadd.f32 %v804_v60, %v272_v2 }
 0x103   :  { %v274_v5 = vpop.f32.mrf.mxu1 }
 0x104   :  { %v615_v6 = vsel %vm605_vm3, %v273_v3, 0.0  ;;  %v861_v5 = vld [vmem:[%s1344_s8 + $0x1] ss:$0 sm:$0xff] }
 0x105   :  { %616 = vadd.xlane.f32.xlu1 %v615_v6 }
 0x10f   :  { %v598_v13 = vpop.f32.mrf.mxu0 }
 0x110   :  { %v599_v14 = vadd.f32 %v598_v13, %v558_v12 }
 0x111   :  { %v600_v15 = vpop.f32.mrf.mxu0 }
 0x112   :  { %v621_v17 = vsel %vm620_vm4, %v599_v14, 0.0 }
 0x113   :  { %v601_v18 = vpop.f32.mrf.mxu0  ;;  %622 = vadd.xlane.f32.xlu0 %v621_v17 }
 0x114   :  { %v602_v19 = vadd.f32 %v601_v18, %v561_v16 }
 0x115   :  { %v603_v20 = vpop.f32.mrf.mxu0 }
 0x116   :  { %v624_v21 = vsel %vm620_vm4, %v602_v19, 0.0 }
 0x117   :  { %625 = vadd.xlane.f32.xlu1 %v624_v21 }
 0x15a   :  { %v608_v22 = vpop.xlane.xlu0 %607 }
 0x15e   :  { %v611_v24 = vpop.xlane.xlu0 %610 }
 0x18a   :  { %v614_v23 = vpop.xlane.xlu1 %613 }
 0x18b   :  { %v618_v25 = vadd.f32 %v614_v23, %v608_v22 }
 0x18e   :  { %v617_v26 = vpop.xlane.xlu1 %616 }
 0x18f   :  { %v619_v29 = vadd.f32 %v617_v26, %v611_v24 }
 0x19c   :  { %v623_v27 = vpop.xlane.xlu0 %622 }
 0x19d   :  { %v627_v28 = vadd.f32 %v623_v27, %v618_v25 }
 0x19f   :  { %v629_v30 = vmul.f32 0.03125, %v627_v28 }
 0x1a0   :  { %v626_v31 = vpop.xlane.xlu1 %625 }
 0x1a1   :  { %v628_v32 = vadd.f32 %v626_v31, %v619_v29  ;;  %v631_v33 = vsub.f32 %v113_v53, %v629_v30  ;;  %v633_v34 = vsub.f32 %v270_v62, %v629_v30  ;;  %v635_v37 = vsub.f32 %v599_v14, %v629_v30  ;;  %v862_v14 = vld [vmem:[%s1344_s8 + $0x2] ss:$0 sm:$0xff]  ;;  %s1039_s8 = smov [#allocation2]  }
 0x1a2   :  { %s756_s23 = sshll.u32 %s1039_s8, 4  ;;  %s757_s23 = int_to_ptr.vmem [resolvable:$true] %s756_s23 }
 0x1a3   :  { %v630_v35 = vmul.f32 0.03125, %v628_v32  ;;  %v637_v36 = vmul.f32 %v631_v33, %v631_v33  ;;  %v645_v39 = vmul.f32 %v633_v34, %v633_v34  ;;  %v655_v43 = vmul.f32 %v635_v37, %v635_v37 }
 0x1a5   :  { %v639_v38 = vsel %vm605_vm3, %v637_v36, 0.0  ;;  %v632_v40 = vsub.f32 %v116_v57, %v630_v35  ;;  %v634_v41 = vsub.f32 %v273_v3, %v630_v35  ;;  %v647_v44 = vsel %vm605_vm3, %v645_v39, 0.0  ;;  %v857_v3 = vld [vmem:[%s1343_s7 + $0x1] ss:$0 sm:$0xff]  ;;  %s768_s7 = sshll.u32 %s1038_s6, 4  ;;  %s769_s7 = int_to_ptr.vmem [resolvable:$true] %s768_s7 }
 0x1a6   :  { %640 = vadd.xlane.f32.xlu0 %v639_v38  ;;  %v636_v47 = vsub.f32 %v602_v19, %v630_v35  ;;  %v657_v48 = vsel %vm620_vm4, %v655_v43, 0.0  ;;  %s971_s1 = scalar_lea.vmem %s769_s7, 128  ;;  %p976_p1 = scmp.lt.s32.totalorder %s769_s7, %s769_s7 }
 0x1a7   :  { %v638_v42 = vmul.f32 %v632_v40, %v632_v40  ;;  %v646_v46 = vmul.f32 %v634_v41, %v634_v41  ;;  %p972_p0 = scmp.ne.s32.totalorder %s769_s7, %s971_s1  ;;  %p977_p2 = scmp.lt.s32.totalorder %s971_s1, %s971_s1 }
 0x1a8   :  { %v656_v50 = vmul.f32 %v636_v47, %v636_v47 }
 0x1a9   :  { %v642_v45 = vsel %vm605_vm3, %v638_v42, 0.0  ;;  %v650_v49 = vsel %vm605_vm3, %v646_v46, 0.0  ;;  %p978_p3 = por %p977_p2, %p976_p1 }
 0x1aa   :  { %648 = vadd.xlane.f32.xlu0 %v647_v44  ;;  %643 = vadd.xlane.f32.xlu1 %v642_v45  ;;  %v660_v51 = vsel %vm620_vm4, %v656_v50, 0.0 }
 0x1ab   :  { %p979_p4 = pnand %p978_p3, %p972_p0 }
 0x1ae   :  { %658 = vadd.xlane.f32.xlu0 %v657_v48  ;;  %651 = vadd.xlane.f32.xlu1 %v650_v49 }
 0x1b2   :  { %661 = vadd.xlane.f32.xlu1 %v660_v51 }
 0x22f   :  { %v641_v52 = vpop.xlane.xlu0 %640 }
 0x233   :  { %v649_v53 = vpop.xlane.xlu0 %648  ;;  %v644_v54 = vpop.xlane.xlu1 %643 }
 0x234   :  { %v653_v55 = vadd.f32 %v649_v53, %v641_v52 }
 0x237   :  { %v659_v56 = vpop.xlane.xlu0 %658  ;;  %v652_v57 = vpop.xlane.xlu1 %651 }
 0x238   :  { %v663_v58 = vadd.f32 %v659_v56, %v653_v55  ;;  %v654_v60 = vadd.f32 %v652_v57, %v644_v54 }
 0x23a   :  { %v665_v59 = vmul.f32 0.03125, %v663_v58 }
 0x23b   :  { %v662_v61 = vpop.xlane.xlu1 %661 }
 0x23c   :  { %v667_v62 = vadd.f32 1e-05, %v665_v59  ;;  %v664_v63 = vadd.f32 %v662_v61, %v654_v60 }
 0x23e   :  { %967 = vrsqrt.f32 %v667_v62  ;;  %v666_v0 = vmul.f32 0.03125, %v664_v63 }
 0x240   :  { %v668_v1 = vadd.f32 1e-05, %v666_v0 }
 0x242   :  { %969 = vrsqrt.f32 %v668_v1 }
 0x24b   :  { %v968_v2 = vpop.eup %967 }
 0x24c   :  { %v698_v6 = vmul.f32 %v968_v2, %v633_v34  ;;  %v671_v7 = vmul.f32 %v968_v2, %v631_v33  ;;  %v724_v8 = vmul.f32 %v968_v2, %v635_v37 }
 0x24e   :  { %v705_v11 = vmul.f32 %v857_v3, %v698_v6  ;;  %v678_v12 = vmul.f32 %v853_v4, %v671_v7  ;;  %v731_v13 = vmul.f32 %v861_v5, %v724_v8 }
 0x24f   :  { %v970_v15 = vpop.eup %969 }
 0x250   :  { %v699_v16 = vmul.f32 %v970_v15, %v634_v41  ;;  %v712_v17 = vadd.f32 %v858_v9, %v705_v11  ;;  %v672_v18 = vmul.f32 %v970_v15, %v632_v40  ;;  %v685_v19 = vadd.f32 %v854_v10, %v678_v12 }
 0x251   :  { %v725_v20 = vmul.f32 %v970_v15, %v636_v47  ;;  %v738_v21 = vadd.f32 %v862_v14, %v731_v13 }
 0x252   :  { %v706_v22 = vmul.f32 %v857_v3, %v699_v16  ;;  %v867_v23 = vpack.c.bf16 %v712_v17, %v712_v17  ;;  %v679_v24 = vmul.f32 %v853_v4, %v672_v18  ;;  %v865_v25 = vpack.c.bf16 %v685_v19, %v685_v19 }
 0x253   :  { %v732_v26 = vmul.f32 %v861_v5, %v725_v20  ;;  %v869_v27 = vpack.c.bf16 %v738_v21, %v738_v21 }
 0x254   :  { %v713_v28 = vadd.f32 %v858_v9, %v706_v22  ;;  %722 = vst.msk [vmem:[#allocation4] sm:$0xf] %vm695_vm5, %v867_v23  ;;  %v686_v29 = vadd.f32 %v854_v10, %v679_v24  ;;  %696 = vst.msk [vmem:[#allocation2] sm:$0xf] %vm695_vm5, %v865_v25 }
 0x255   :  { %v739_v30 = vadd.f32 %v862_v14, %v732_v26  ;;  %749 = vst.msk [vmem:[#allocation6] sm:$0xf] %vm748_vm6, %v869_v27 }
 0x256   :  { %v868_v31 = vpack.c.bf16 %v713_v28, %v713_v28  ;;  %v866_v32 = vpack.c.bf16 %v686_v29, %v686_v29 }
 0x257   :  { %v870_v33 = vpack.c.bf16 %v739_v30, %v739_v30 }
 0x258   :  { %723 = vst.msk [vmem:[#allocation4 + $0x4] sm:$0xf] %vm695_vm5, %v868_v31  ;;  %697 = vst.msk [vmem:[#allocation2 + $0x4] sm:$0xf] %vm695_vm5, %v866_v32 }
 0x259   :  { %982 = shalt.err (!%p979_p4)
}
 0x25a   :  { %s1041_s26 = smov 64   ;;  %s1042_s27 = smov 4   ;;  %750 = vst.msk [vmem:[#allocation6 + $0x4] sm:$0xf] %vm748_vm6, %v870_v33 }
 0x25b   :  { %774 = dma.vmem_to_hbm [thread:$0]  %s769_s7, 128, %s1346_s10, [#allocation5], %s1041_s26, %s1041_s26, %s1042_s27  }
 0x25c   :  { %s991_s30 = scalar_lea.vmem %s757_s23, 128  ;;  %p996_p6 = scmp.lt.s32.totalorder %s757_s23, %s757_s23 }
 0x25d   :  { %p992_p5 = scmp.ne.s32.totalorder %s757_s23, %s991_s30  ;;  %p997_p7 = scmp.lt.s32.totalorder %s991_s30, %s991_s30 }
 0x25f   :  { %p998_p8 = por %p997_p7, %p996_p6 }
 0x261   :  { %p999_p9 = pnand %p998_p8, %p992_p5 }
 0x263   :  { %1002 = shalt.err (!%p999_p9)
}
 0x264   :  { %762 = dma.vmem_to_hbm [thread:$0]  %s757_s23, 128, %s1345_s9, [#allocation3], %s1041_s26, %s1041_s26, %s1042_s27  }
 0x265   :  { %s1011_s12 = scalar_lea.vmem %s1319_s25, 128  ;;  %p1016_p11 = scmp.lt.s32.totalorder %s1319_s25, %s1319_s25 }
 0x266   :  { %p1012_p10 = scmp.ne.s32.totalorder %s1319_s25, %s1011_s12  ;;  %p1017_p12 = scmp.lt.s32.totalorder %s1011_s12, %s1011_s12 }
 0x268   :  { %p1018_p13 = por %p1017_p12, %p1016_p11 }
 0x26a   :  { %p1019_p0 = pnand %p1018_p13, %p1012_p10 }
 0x26c   :  { %1022 = shalt.err (!%p1019_p0)
}
 0x26d   :  { %786 = dma.vmem_to_hbm [thread:$0]  %s1319_s25, 128, %s1347_s11, [#allocation5], %s1041_s26, %s1041_s26, %s1042_s27  }
 0x26e   :  { %1031 = dma.done.wait [#allocation3], 128  }
 0x26f   :  { %1032 = vsyncadd [#allocation3], 4294967168 }
 0x270   :  { %1033 = dma.done.wait [#allocation5], 256  }
 0x271   :  { %1034 = vsyncadd [#allocation5], 4294967040 }
 0x272   :  { %796 = vsyncpa [#allocation3], 1 }
 0x273   :  { %797 = vsyncpa [#allocation5], 1 }

</bundles_post_ra>
